<compile_context>
chip_gen: v7x
topology: tpu7x:2x2x1
jax: 0.10.0
libtpu: 0.0.40
codegen_flags: <defaults>
</compile_context>

<pallas_src>
import functools

import jax
import jax.numpy as jnp
from jax.experimental import pallas as pl
from jax.experimental.pallas import tpu as pltpu


def _device_kind():
    try:
        return jax.devices()[0].device_kind.lower()
    except Exception:  # pragma: no cover - defensive
        return ""


def _ceil_to(a, b):
    return -(-a // b) * b


def _padded_block_bytes(shape, dtype):
    """VMEM footprint of one buffer of this block: last dim -> 128 lanes,
    second-to-last -> dtype-dependent sublane multiple."""
    itemsize = jnp.dtype(dtype).itemsize
    sub = {4: 8, 2: 16, 1: 32}.get(itemsize, 8)
    shape = tuple(shape)
    if len(shape) < 2:
        shape = (1,) * (2 - len(shape)) + shape
    lead = 1
    for d in shape[:-2]:
        lead *= d
    return lead * _ceil_to(shape[-2], sub) * _ceil_to(shape[-1], 128) * itemsize


def _se_tail_kernel(xse_ref, w1_ref, b1_ref, x_ref, w2_ref, o_ref, *, vpu_dtype, mxu_dtype):
    # xse_ref: [1, Cin]      squeezed SE input (f32)
    # w1_ref:  [Cmid, Cin]   conv2d190 weight, native OIHW view (f32)
    # b1_ref:  [Cmid, 1]     conv2d190 bias column (f32)
    # x_ref:   [Cmid, HW]    main activation x595, native NCHW view (f32)
    # w2_ref:  [Ct, Cmid]    conv2d191 weight tile, already mxu_dtype (bf16-resident in HBM)
    # o_ref:   [Ct, HW]
    #
    # conv2d190 on a 1x1 spatial map == per-output-channel dot over Cin.
    # Done on VPU (mul) + XLU (lane reduce) instead of an M=1 MXU matmul; f32 for accuracy.
    se = jnp.sum(w1_ref[...] * xse_ref[...], axis=-1, keepdims=True)      # [Cmid, 1] f32
    gate = jax.nn.sigmoid(se + b1_ref[...])                               # [Cmid, 1] f32 (EUP)
    # Broadcast multiply over spatial positions; bf16 on chips with a bf16 VPU path.
    y = x_ref[...].astype(vpu_dtype) * gate.astype(vpu_dtype)             # [Cmid, HW]
    # conv2d191 (1x1, no bias) == w2 @ y, emitted directly in [Cout, HW] layout.
    o_ref[...] = jnp.dot(
        w2_ref[...],                      # already mxu_dtype; no per-call cast, no extra HBM bytes
        y.astype(mxu_dtype),              # no-op when vpu_dtype == mxu_dtype
        preferred_element_type=jnp.float32,
    ).astype(o_ref.dtype)


def se_tail(x_se, w1, b1, x, w2, *, cout_tiles=None, mxu_dtype=jnp.bfloat16):
    """x_se: [1, Cin, 1, 1]; w1: [Cmid, Cin, 1, 1]; b1: [Cmid];
       x: [1, Cmid, H, W]; w2: [Cout, Cmid, 1, 1] (ideally pre-cast to bf16)
       -> [1, Cout, H, W]

    For accuracy-sensitive use (very long Cmid contractions), pass mxu_dtype=jnp.float32."""
    # Kernel assumes batch == 1 (as in the source module); assert instead of silently mis-reshaping.
    assert x.shape[0] == 1, f"batch must be 1, got {x.shape[0]}"
    assert x_se.shape[0] == 1 and x_se.shape[2] == 1 and x_se.shape[3] == 1, x_se.shape

    _, cin, _, _ = x_se.shape
    cmid = w1.shape[0]
    cout = w2.shape[0]
    _, xc, H, W = x.shape
    hw = H * W
    assert w1.shape[1] == cin and xc == cmid and w2.shape[1] == cmid

    kind = _device_kind()
    is_v7 = "v7" in kind
    has_bf16_vpu = ("v6" in kind) or is_v7      # v5e and older: no bf16 VALU path
    vpu_dtype = mxu_dtype if (has_bf16_vpu and mxu_dtype != jnp.float32) else jnp.float32

    # All of these are free views of the native NCHW / OIHW layouts (no transposes).
    xse2 = x_se.reshape(1, cin)            # [1, Cin]
    w1m = w1.reshape(cmid, cin)            # [Cmid, Cin]
    b1c = b1.reshape(cmid, 1)              # [Cmid, 1]
    x2 = x.reshape(cmid, hw)               # [Cmid, HW]
    w2m = w2.reshape(cout, cmid)           # [Cout, Cmid]
    if w2m.dtype != mxu_dtype:
        # NOTE: for best performance pre-cast w2 to mxu_dtype once at parameter-load time
        # (see __main__); this per-call cast keeps correctness but not the HBM-byte saving.
        w2m = w2m.astype(mxu_dtype)

    out_dtype = x.dtype
    out_sub = {4: 8, 2: 16, 1: 32}.get(jnp.dtype(out_dtype).itemsize, 8)

    # Generation-gated Cout split: only worth it when there are 2 TensorCores (v7x).
    if cout_tiles is None:
        cout_tiles = 2 if is_v7 else 1
    if cout_tiles < 1 or cout % cout_tiles != 0 or (cout // cout_tiles) % out_sub != 0:
        cout_tiles = 1

    def _build_call(n_tiles, core_parallel):
        tc = cout // n_tiles
        # VMEM sizing from padded block shapes (double-buffered) + headroom.
        padded = (
            _padded_block_bytes((1, cin), jnp.float32)
            + _padded_block_bytes((cmid, cin), jnp.float32)
            + _padded_block_bytes((cmid, 1), jnp.float32)
            + _padded_block_bytes((cmid, hw), jnp.float32)
            + _padded_block_bytes((tc, cmid), mxu_dtype)
            + _padded_block_bytes((tc, hw), out_dtype)
        )
        vmem_limit = int(min(max(2 * padded + (8 << 20), 16 << 20), 48 << 20))

        flops = 2 * cout * cmid * hw + n_tiles * (2 * cmid * cin + 2 * cmid * hw)
        bytes_accessed = (
            4 * (cin + cmid * cin + cmid + cmid * hw + cout * hw)
            + jnp.dtype(mxu_dtype).itemsize * cout * cmid
        )
        dim_sem = (pltpu.CORE_PARALLEL,) if core_parallel else ("arbitrary",)
        kernel = functools.partial(_se_tail_kernel, vpu_dtype=vpu_dtype, mxu_dtype=mxu_dtype)
        return pl.pallas_call(
            kernel,
            out_shape=jax.ShapeDtypeStruct((cout, hw), out_dtype),
            grid=(n_tiles,),
            in_specs=[
                pl.BlockSpec((1, cin), lambda i: (0, 0)),      # xse   (constant across tiles)
                pl.BlockSpec((cmid, cin), lambda i: (0, 0)),   # w1    (constant across tiles)
                pl.BlockSpec((cmid, 1), lambda i: (0, 0)),     # b1    (constant across tiles)
                pl.BlockSpec((cmid, hw), lambda i: (0, 0)),    # x     (constant across tiles)
                pl.BlockSpec((tc, cmid), lambda i: (i, 0)),    # w2 tile
            ],
            out_specs=pl.BlockSpec((tc, hw), lambda i: (i, 0)),
            compiler_params=pltpu.CompilerParams(
                dimension_semantics=dim_sem,
                vmem_limit_bytes=vmem_limit,
            ),
            cost_estimate=pl.CostEstimate(
                flops=flops, transcendentals=cmid * n_tiles, bytes_accessed=bytes_accessed
            ),
        )

    args = (xse2, w1m, b1c, x2, w2m)
    if is_v7 and cout_tiles == 2:
        # True cross-core split on v7x; fall back to a single tile if this toolchain
        # rejects the CORE_PARALLEL grid semantics.
        try:
            out2 = _build_call(2, True)(*args)
        except Exception:
            out2 = _build_call(1, False)(*args)
    else:
        out2 = _build_call(cout_tiles, False)(*args)

    return out2.reshape(1, cout, H, W)   # free reshape back to NCHW


def _reference(x_se, w1, b1, x, w2):
    cin = x_se.shape[1]
    cmid, cout = w1.shape[0], w2.shape[0]
    se = jnp.einsum('oc,c->o', w1.reshape(cmid, cin), x_se.reshape(cin)) + b1
    gate = jax.nn.sigmoid(se).reshape(1, cmid, 1, 1)
    y = x * gate
    return jnp.einsum('oc,nchw->nohw', w2.reshape(cout, cmid).astype(jnp.float32), y)


if __name__ == "__main__":
    # Small shapes consistent with the module (original: Cin=56, Cmid=1344, Cout=384, H=W=7).
    Cin, Cmid, Cout, H, W = 16, 128, 64, 7, 7

    key = jax.random.PRNGKey(0)
    k1, k2, k3, k4, k5 = jax.random.split(key, 5)
    x595 = jax.random.normal(k1, (1, Cmid, H, W), jnp.float32)           # main activation
    x598 = jax.random.normal(k2, (1, Cin, 1, 1), jnp.float32)            # squeezed SE input
    w1 = jax.random.normal(k3, (Cmid, Cin, 1, 1), jnp.float32) * 0.05    # conv2d190 weight
    b1 = jax.random.normal(k4, (Cmid,), jnp.float32) * 0.05              # conv2d190 bias
    w2 = jax.random.normal(k5, (Cout, Cmid, 1, 1), jnp.float32) * 0.05   # conv2d191 weight

    # One-time "parameter load" cast: the big 1x1-conv weight lives in HBM as bf16,
    # halving the dominant HBM read of this bandwidth-bound kernel.
    w2_bf16 = w2.astype(jnp.bfloat16)

    out = se_tail(x598, w1, b1, x595, w2_bf16)
    jax.block_until_ready(out)

    ref = _reference(x598, w1, b1, x595, w2)
    assert out.shape == (1, Cout, H, W), out.shape
    # bf16 MXU operands (f32 accumulation) -> relaxed tolerance vs f32 reference
    assert jnp.allclose(out, ref, atol=2e-2, rtol=2e-2), float(jnp.max(jnp.abs(out - ref)))

    print("KERNEL_OK")
</pallas_src>

<mosaic_0001>
module attributes {stable_mosaic.version = 11 : i64} {
  func.func @_se_tail_kernel(%arg0: i32, %arg1: memref<1x16xf32, #tpu.memory_space<vmem>>, %arg2: memref<128x16xf32, #tpu.memory_space<vmem>>, %arg3: memref<128x1xf32, #tpu.memory_space<vmem>>, %arg4: memref<128x49xf32, #tpu.memory_space<vmem>>, %arg5: memref<64x128xbf16, #tpu.memory_space<vmem>>, %arg6: memref<64x49xf32, #tpu.memory_space<vmem>>) attributes {dimension_semantics = [#tpu.dimension_semantics<arbitrary>], iteration_bounds = array<i64: 1>, scalar_prefetch = 0 : i64, scratch_operands = 0 : i64, tpu.core_type = #tpu.core_type<tc>, window_params = [{pipeline_mode = #tpu.pipeline_mode<synchronous>, transform_indices = @transform_0, window_bounds = array<i64: 1, 16>}, {pipeline_mode = #tpu.pipeline_mode<synchronous>, transform_indices = @transform_1, window_bounds = array<i64: 128, 16>}, {pipeline_mode = #tpu.pipeline_mode<synchronous>, transform_indices = @transform_2, window_bounds = array<i64: 128, 1>}, {pipeline_mode = #tpu.pipeline_mode<synchronous>, transform_indices = @transform_3, window_bounds = array<i64: 128, 49>}, {transform_indices = @transform_4, window_bounds = array<i64: 64, 128>}, {transform_indices = @transform_5, window_bounds = array<i64: 64, 49>}]} {
    %c0 = arith.constant 0 : index
    %c0_0 = arith.constant 0 : index
    %0 = vector.load %arg2[%c0, %c0_0] : memref<128x16xf32, #tpu.memory_space<vmem>>, vector<128x16xf32>
    %c0_1 = arith.constant 0 : index
    %c0_2 = arith.constant 0 : index
    %1 = vector.load %arg1[%c0_1, %c0_2] : memref<1x16xf32, #tpu.memory_space<vmem>>, vector<1x16xf32>
    %2 = vector.broadcast %1 : vector<1x16xf32> to vector<128x16xf32>
    %3 = arith.mulf %0, %2 : vector<128x16xf32>
    %cst = arith.constant dense<0.000000e+00> : vector<128xf32>
    %4 = vector.multi_reduction <add>, %3, %cst [1] : vector<128x16xf32> to vector<128xf32>
    %5 = vector.shape_cast %4 : vector<128xf32> to vector<128x1xf32>
    %c0_3 = arith.constant 0 : index
    %c0_4 = arith.constant 0 : index
    %6 = vector.load %arg3[%c0_3, %c0_4] : memref<128x1xf32, #tpu.memory_space<vmem>>, vector<128x1xf32>
    %7 = arith.addf %5, %6 : vector<128x1xf32>
    %8 = arith.negf %7 : vector<128x1xf32>
    %9 = math.exp %8 : vector<128x1xf32>
    %cst_5 = arith.constant 1.000000e+00 : f32
    %10 = vector.broadcast %cst_5 : f32 to vector<128x1xf32>
    %11 = arith.addf %10, %9 : vector<128x1xf32>
    %12 = arith.divf %10, %11 : vector<128x1xf32>
    %c0_6 = arith.constant 0 : index
    %c0_7 = arith.constant 0 : index
    %13 = vector.load %arg4[%c0_6, %c0_7] : memref<128x49xf32, #tpu.memory_space<vmem>>, vector<128x49xf32>
    %14 = vector.broadcast %12 : vector<128x1xf32> to vector<128x49xf32>
    %15 = arith.mulf %13, %14 : vector<128x49xf32>
    %c0_8 = arith.constant 0 : index
    %c0_9 = arith.constant 0 : index
    %16 = vector.load %arg5[%c0_8, %c0_9] : memref<64x128xbf16, #tpu.memory_space<vmem>>, vector<64x128xbf16>
    %17 = arith.truncf %15 : vector<128x49xf32> to vector<128x49xbf16>
    %cst_10 = arith.constant dense<0.000000e+00> : vector<64x49xf32>
    %18 = tpu.matmul %16, %17, %cst_10 {dimension_numbers = #tpu.dot_dimension_numbers<[1], [0], [0], [1], [0, 0, 1, 1], [], []>} : vector<64x128xbf16>, vector<128x49xbf16>, vector<64x49xf32> -> vector<64x49xf32>
    %c0_11 = arith.constant 0 : index
    %c0_12 = arith.constant 0 : index
    %19 = vector.load %arg6[%c0_11, %c0_12] : memref<64x49xf32, #tpu.memory_space<vmem>>, vector<64x49xf32>
    tpu.vector_store %arg6[%c0_11, %c0_12], %18 {strides = array<i32>} : memref<64x49xf32, #tpu.memory_space<vmem>>, vector<64x49xf32>,
    return
  }
  func.func @transform_0(%arg0: i32) -> (i32, i32) {
    %c0_i32 = arith.constant 0 : i32
    %c0_i32_0 = arith.constant 0 : i32
    %c0_i32_1 = arith.constant 0 : i32
    return %c0_i32, %c0_i32_0 : i32, i32
  }
  func.func @transform_1(%arg0: i32) -> (i32, i32) {
    %c0_i32 = arith.constant 0 : i32
    %c0_i32_0 = arith.constant 0 : i32
    %c0_i32_1 = arith.constant 0 : i32
    return %c0_i32, %c0_i32_0 : i32, i32
  }
  func.func @transform_2(%arg0: i32) -> (i32, i32) {
    %c0_i32 = arith.constant 0 : i32
    %c0_i32_0 = arith.constant 0 : i32
    %c0_i32_1 = arith.constant 0 : i32
    return %c0_i32, %c0_i32_0 : i32, i32
  }
  func.func @transform_3(%arg0: i32) -> (i32, i32) {
    %c0_i32 = arith.constant 0 : i32
    %c0_i32_0 = arith.constant 0 : i32
    %c0_i32_1 = arith.constant 0 : i32
    return %c0_i32, %c0_i32_0 : i32, i32
  }
  func.func @transform_4(%arg0: i32) -> (i32, i32) {
    %c0_i32 = arith.constant 0 : i32
    %c0_i32_0 = arith.constant 0 : i32
    return %arg0, %c0_i32 : i32, i32
  }
  func.func @transform_5(%arg0: i32) -> (i32, i32) {
    %c0_i32 = arith.constant 0 : i32
    %c0_i32_0 = arith.constant 0 : i32
    return %arg0, %c0_i32 : i32, i32
  }
}

</mosaic_0001>

<bundles_post_ra>
// kernel: tpu_custom_call.1
= control target key start
LH: loop header
LB: loop body
LE: loop exit
PB: predicated region body
PF: predicated region fallthrough
CT: control target
= control target key end

     0   :  { %vm60_vm0 = vcmask 130048   ;;  %v611_v49 = vmov 0   ;;  %vm454_vm1 = vcmask 400384   ;;  %s849_s0 = inlined_call_operand.vmem [shape: f32[1,16], index: 0, kind: input, shape index: {}]   ;;  %s850_s1 = inlined_call_operand.vmem [shape: f32[128,16], index: 1, kind: input, shape index: {}]   ;;  %s851_s2 = inlined_call_operand.vmem [shape: f32[128,1], index: 2, kind: input, shape index: {}]   ;;  %s852_s4 = inlined_call_operand.vmem [shape: bf16[64,128], index: 4, kind: input, shape index: {}]   ;;  %s853_s3 = inlined_call_operand.vmem [shape: f32[128,49], index: 3, kind: input, shape index: {}]   ;;  %s854_s5 = inlined_call_operand.vmem [shape: f32[64,49], index: 5, kind: output, shape index: {}]  }
   0x1   :  { %v23_v0 = vld [vmem:[%s850_s1 + $0x10] sm:$0xff]  ;;  %v467_v1 = vld [vmem:[%s849_s0] ss:$0 sm:$0xff]  ;;  %v24_v5 = vld [vmem:[%s850_s1 + $0x18] sm:$0xff]  ;;  %541 = vset.pattern.permute.xlu0 %v611_v49  ;;  %542 = vset.pattern.permute.xlu1 %v611_v49 }
   0x2   :  { %v21_v2 = vld [vmem:[%s850_s1] sm:$0xff]  ;;  %v46_v3 = vmul.f32 %v467_v1, %v23_v0  ;;  %v22_v6 = vld [vmem:[%s850_s1 + $0x8] sm:$0xff]  ;;  %v47_v7 = vmul.f32 %v467_v1, %v24_v5  ;;  %v28_v17 = vld [vmem:[%s850_s1 + $0x38] sm:$0xff] }
   0x3   :  { %v44_v4 = vmul.f32 %v467_v1, %v21_v2  ;;  %v45_v8 = vmul.f32 %v467_v1, %v22_v6  ;;  %v26_v9 = vld [vmem:[%s850_s1 + $0x28] sm:$0xff]  ;;  %v25_v10 = vld [vmem:[%s850_s1 + $0x20] sm:$0xff]  ;;  %v27_v18 = vld [vmem:[%s850_s1 + $0x30] sm:$0xff]  ;;  %v51_v20 = vmul.f32 %v467_v1, %v28_v17 }
   0x4   :  { %v67_v11 = vsel %vm60_vm0, %v46_v3, 0.0  ;;  %v70_v13 = vsel %vm60_vm0, %v47_v7, 0.0  ;;  %v49_v15 = vmul.f32 %v467_v1, %v26_v9  ;;  %v48_v16 = vmul.f32 %v467_v1, %v25_v10  ;;  %v30_v23 = vld [vmem:[%s850_s1 + $0x48] sm:$0xff]  ;;  %v29_v24 = vld [vmem:[%s850_s1 + $0x40] sm:$0xff]  ;;  %v32_v29 = vld [vmem:[%s850_s1 + $0x58] sm:$0xff] }
   0x5   :  { %v61_v12 = vsel %vm60_vm0, %v44_v4, 0.0  ;;  %68 = vadd.xlane.f32.xlu1 %v67_v11  ;;  %v64_v14 = vsel %vm60_vm0, %v45_v8, 0.0  ;;  %v50_v22 = vmul.f32 %v467_v1, %v27_v18  ;;  %v82_v25 = vsel %vm60_vm0, %v51_v20, 0.0  ;;  %v31_v30 = vld [vmem:[%s850_s1 + $0x50] sm:$0xff]  ;;  %v34_v35 = vld [vmem:[%s850_s1 + $0x68] sm:$0xff]  ;;  %v33_v36 = vld [vmem:[%s850_s1 + $0x60] sm:$0xff] }
   0x6   :  { %62 = vadd.xlane.f32.xlu0 %v61_v12  ;;  %v76_v19 = vsel %vm60_vm0, %v49_v15, 0.0  ;;  %v73_v21 = vsel %vm60_vm0, %v48_v16, 0.0  ;;  %v53_v26 = vmul.f32 %v467_v1, %v30_v23  ;;  %v52_v28 = vmul.f32 %v467_v1, %v29_v24  ;;  %v36_v41 = vld [vmem:[%s850_s1 + $0x78] sm:$0xff]  ;;  %v35_v42 = vld [vmem:[%s850_s1 + $0x70] sm:$0xff]  ;;  %v109_v51 = vld [vmem:[%s851_s2] sm:$0xff] }
   0x7   :  { %v79_v27 = vsel %vm60_vm0, %v50_v22, 0.0  ;;  %v55_v32 = vmul.f32 %v467_v1, %v32_v29  ;;  %v54_v34 = vmul.f32 %v467_v1, %v31_v30  ;;  %v57_v38 = vmul.f32 %v467_v1, %v34_v35  ;;  %v111_v50 = vld [vmem:[%s851_s2 + $0x10] sm:$0xff]  ;;  %v112_v56 = vld [vmem:[%s851_s2 + $0x18] sm:$0xff]  ;;  %v110_v57 = vld [vmem:[%s851_s2 + $0x8] sm:$0xff] }
   0x8   :  { %v88_v31 = vsel %vm60_vm0, %v53_v26, 0.0  ;;  %v85_v33 = vsel %vm60_vm0, %v52_v28, 0.0  ;;  %v56_v40 = vmul.f32 %v467_v1, %v33_v36  ;;  %v59_v44 = vmul.f32 %v467_v1, %v36_v41  ;;  %v113_v0 = vld [vmem:[%s851_s2 + $0x20] sm:$0xff]  ;;  %v114_v5 = vld [vmem:[%s851_s2 + $0x28] sm:$0xff]  ;;  %v115_v11 = vld [vmem:[%s851_s2 + $0x30] sm:$0xff] }
   0x9   :  { %71 = vadd.xlane.f32.xlu1 %v70_v13  ;;  %v94_v37 = vsel %vm60_vm0, %v55_v32, 0.0  ;;  %v91_v39 = vsel %vm60_vm0, %v54_v34, 0.0  ;;  %v100_v43 = vsel %vm60_vm0, %v57_v38, 0.0  ;;  %v58_v46 = vmul.f32 %v467_v1, %v35_v42  ;;  %v118_v12 = vld [vmem:[%s851_s2 + $0x48] sm:$0xff]  ;;  %v116_v16 = vld [vmem:[%s851_s2 + $0x38] sm:$0xff]  ;;  %v117_v32 = vld [vmem:[%s851_s2 + $0x40] sm:$0xff] }
   0xa   :  { %65 = vadd.xlane.f32.xlu0 %v64_v14  ;;  %v97_v45 = vsel %vm60_vm0, %v56_v40, 0.0  ;;  %v106_v47 = vsel %vm60_vm0, %v59_v44, 0.0  ;;  %v120_v23 = vld [vmem:[%s851_s2 + $0x58] sm:$0xff]  ;;  %v122_v34 = vld [vmem:[%s851_s2 + $0x68] sm:$0xff]  ;;  %v119_v41 = vld [vmem:[%s851_s2 + $0x50] sm:$0xff] }
   0xb   :  { %v103_v48 = vsel %vm60_vm0, %v58_v46, 0.0 }
   0xd   :  { %77 = vadd.xlane.f32.xlu1 %v76_v19 }
   0xe   :  { %74 = vadd.xlane.f32.xlu0 %v73_v21 }
  0x11   :  { %83 = vadd.xlane.f32.xlu1 %v82_v25 }
  0x12   :  { %80 = vadd.xlane.f32.xlu0 %v79_v27 }
  0x15   :  { %89 = vadd.xlane.f32.xlu1 %v88_v31 }
  0x16   :  { %86 = vadd.xlane.f32.xlu0 %v85_v33 }
  0x19   :  { %95 = vadd.xlane.f32.xlu1 %v94_v37 }
  0x1a   :  { %92 = vadd.xlane.f32.xlu0 %v91_v39 }
  0x1d   :  { %101 = vadd.xlane.f32.xlu1 %v100_v43  ;;  %v124_v43 = vld [vmem:[%s851_s2 + $0x78] sm:$0xff] }
  0x1e   :  { %98 = vadd.xlane.f32.xlu0 %v97_v45 }
  0x21   :  { %107 = vadd.xlane.f32.xlu1 %v106_v47 }
  0x22   :  { %104 = vadd.xlane.f32.xlu0 %v103_v48 }
  0x92   :  { %v69_v52 = vpop.xlane.xlu1 %68 }
  0x93   :  { %v63_v53 = vpop.xlane.xlu0 %62  ;;  %v127_v54 = vadd.f32 %v111_v50, %v69_v52  ;;  %v121_v52 = vld [vmem:[%s851_s2 + $0x60] sm:$0xff] }
  0x94   :  { %v125_v55 = vadd.f32 %v109_v51, %v63_v53 }
  0x95   :  { %v470_v58 = vmul.f32 -1.442695, %v127_v54 }
  0x96   :  { %v468_v59 = vmul.f32 -1.442695, %v125_v55  ;;  %v72_v60 = vpop.xlane.xlu1 %71 }
  0x97   :  { %v66_v61 = vpop.xlane.xlu0 %65  ;;  %547 = vpow2.f32 %v470_v58  ;;  %v128_v62 = vadd.f32 %v112_v56, %v72_v60 }
  0x98   :  { %v126_v63 = vadd.f32 %v110_v57, %v66_v61  ;;  %549 = vpow2.f32 %v468_v59 }
  0x99   :  { %v471_v1 = vmul.f32 -1.442695, %v128_v62  ;;  %v123_v62 = vld [vmem:[%s851_s2 + $0x70] sm:$0xff] }
  0x9a   :  { %v469_v2 = vmul.f32 -1.442695, %v126_v63  ;;  %v78_v3 = vpop.xlane.xlu1 %77 }
  0x9b   :  { %v75_v4 = vpop.xlane.xlu0 %74  ;;  %v130_v7 = vadd.f32 %v114_v5, %v78_v3 }
  0x9c   :  { %v129_v6 = vadd.f32 %v113_v0, %v75_v4  ;;  %551 = vpow2.f32 %v469_v2 }
  0x9d   :  { %553 = vpow2.f32 %v471_v1  ;;  %v473_v15 = vmul.f32 -1.442695, %v130_v7 }
  0x9e   :  { %v84_v8 = vpop.xlane.xlu1 %83  ;;  %v472_v9 = vmul.f32 -1.442695, %v129_v6 }
  0x9f   :  { %v81_v10 = vpop.xlane.xlu0 %80  ;;  %v132_v24 = vadd.f32 %v116_v16, %v84_v8 }
  0xa0   :  { %555 = vpow2.f32 %v472_v9  ;;  %v131_v18 = vadd.f32 %v115_v11, %v81_v10 }
  0xa1   :  { %v548_v13 = vpop.eup %547  ;;  %v475_v35 = vmul.f32 -1.442695, %v132_v24 }
  0xa2   :  { %v550_v14 = vpop.eup %549  ;;  %v90_v17 = vpop.xlane.xlu1 %89  ;;  %v191_v22 = vadd.f32 1.0, %v548_v13  ;;  %v474_v28 = vmul.f32 -1.442695, %v131_v18 }
  0xa3   :  { %v87_v19 = vpop.xlane.xlu0 %86  ;;  %v189_v20 = vadd.f32 1.0, %v550_v14  ;;  %v134_v21 = vadd.f32 %v118_v12, %v90_v17 }
  0xa4   :  { %v133_v39 = vadd.f32 %v117_v32, %v87_v19 }
  0xa5   :  { %557 = vrcp.f32 %v189_v20  ;;  %v477_v25 = vmul.f32 -1.442695, %v134_v21 }
  0xa6   :  { %v552_v26 = vpop.eup %551  ;;  %559 = vpow2.f32 %v473_v15  ;;  %v96_v27 = vpop.xlane.xlu1 %95  ;;  %v476_v47 = vmul.f32 -1.442695, %v133_v39 }
  0xa7   :  { %v554_v29 = vpop.eup %553  ;;  %v190_v30 = vadd.f32 1.0, %v552_v26  ;;  %561 = vpow2.f32 %v477_v25  ;;  %v136_v31 = vadd.f32 %v120_v23, %v96_v27  ;;  %v93_v33 = vpop.xlane.xlu0 %92 }
  0xa8   :  { %563 = vrcp.f32 %v191_v22  ;;  %v192_v37 = vadd.f32 1.0, %v554_v29  ;;  %v135_v48 = vadd.f32 %v119_v41, %v93_v33 }
  0xa9   :  { %565 = vrcp.f32 %v190_v30  ;;  %v479_v36 = vmul.f32 -1.442695, %v136_v31 }
  0xaa   :  { %v102_v38 = vpop.xlane.xlu1 %101  ;;  %567 = vpow2.f32 %v474_v28  ;;  %v556_v42 = vpop.eup %555  ;;  %v478_v58 = vmul.f32 -1.442695, %v135_v48 }
  0xab   :  { %569 = vpow2.f32 %v479_v36  ;;  %v138_v40 = vadd.f32 %v122_v34, %v102_v38  ;;  %v99_v45 = vpop.xlane.xlu0 %98  ;;  %v193_v50 = vadd.f32 1.0, %v556_v42  ;;  %v543_v34 = vld [vmem:[%s852_s4] sm:$0xff]   ;;  %v238_v38 = vld [vmem:[%s853_s3 + $0x8] sm:$0xff] }
  0xac   :  { %571 = vpow2.f32 %v475_v35  ;;  %v137_v59 = vadd.f32 %v121_v52, %v99_v45  ;;  %v544_v35 = vld [vmem:[%s852_s4 + $0x10] sm:$0xff]   ;;  %516 = vmatprep.mubr.bf16.mxu0 %v543_v34  ;;  %v237_v36 = vld [vmem:[%s853_s3] sm:$0xff]  ;;  %v240_v45 = vld [vmem:[%s853_s3 + $0x18] sm:$0xff] }
  0xad   :  { %v481_v44 = vmul.f32 -1.442695, %v138_v40  ;;  %573 = vrcp.f32 %v192_v37  ;;  %520 = vmatprep.mubr.bf16.mxu1 %v544_v35  ;;  %v242_v52 = vld [vmem:[%s853_s3 + $0x28] sm:$0xff] }
  0xae   :  { %v108_v46 = vpop.xlane.xlu1 %107  ;;  %v480_v3 = vmul.f32 -1.442695, %v137_v59  ;;  %v243_v59 = vld [vmem:[%s853_s3 + $0x30] sm:$0xff] }
  0xaf   :  { %v558_v49 = vpop.eup %557  ;;  %575 = vpow2.f32 %v481_v44  ;;  %v140_v51 = vadd.f32 %v124_v43, %v108_v46  ;;  %v105_v63 = vpop.xlane.xlu0 %104  ;;  %v239_v44 = vld [vmem:[%s853_s3 + $0x10] sm:$0xff] }
  0xb0   :  { %v560_v53 = vpop.eup %559  ;;  %255 = vperm.xlu0 %541, %v558_v49   ;;  %577 = vpow2.f32 %v476_v47  ;;  %v139_v4 = vadd.f32 %v123_v62, %v105_v63 }
  0xb1   :  { %v562_v54 = vpop.eup %561  ;;  %v483_v55 = vmul.f32 -1.442695, %v140_v51  ;;  %v194_v61 = vadd.f32 1.0, %v560_v53  ;;  %579 = vrcp.f32 %v193_v50  ;;  %v241_v51 = vld [vmem:[%s853_s3 + $0x20] sm:$0xff] }
  0xb2   :  { %v564_v56 = vpop.eup %563  ;;  %v198_v57 = vadd.f32 1.0, %v562_v54  ;;  %v482_v10 = vmul.f32 -1.442695, %v139_v4 }
  0xb3   :  { %v566_v60 = vpop.eup %565 }
  0xb4   :  { %v568_v0 = vpop.eup %567  ;;  %581 = vrcp.f32 %v198_v57  ;;  %260 = vperm.xlu1 %542, %v566_v60   ;;  %v244_v60 = vld [vmem:[%s853_s3 + $0x38] sm:$0xff] }
  0xb5   :  { %v570_v1 = vpop.eup %569  ;;  %583 = vpow2.f32 %v483_v55  ;;  %v195_v6 = vadd.f32 1.0, %v568_v0  ;;  %v246_v0 = vld [vmem:[%s853_s3 + $0x48] sm:$0xff] }
  0xb6   :  { %v200_v2 = vadd.f32 1.0, %v570_v1  ;;  %585 = vpow2.f32 %v478_v58  ;;  %v572_v5 = vpop.eup %571 }
  0xb7   :  { %587 = vrcp.f32 %v194_v61  ;;  %v574_v7 = vpop.eup %573  ;;  %v196_v11 = vadd.f32 1.0, %v572_v5 }
  0xb8   :  { %589 = vrcp.f32 %v200_v2  ;;  %265 = vperm.xlu1 %542, %v564_v56   ;;  %v245_v2 = vld [vmem:[%s853_s3 + $0x40] sm:$0xff] }
  0xb9   :  { %v576_v8 = vpop.eup %575  ;;  %591 = vpow2.f32 %v480_v3 }
  0xba   :  { %v202_v9 = vadd.f32 1.0, %v576_v8  ;;  %593 = vrcp.f32 %v195_v6  ;;  %v578_v12 = vpop.eup %577  ;;  %v247_v8 = vld [vmem:[%s853_s3 + $0x50] sm:$0xff] }
  0xbb   :  { %v580_v13 = vpop.eup %579  ;;  %v197_v16 = vadd.f32 1.0, %v578_v12 }
  0xbc   :  { %595 = vrcp.f32 %v202_v9  ;;  %270 = vperm.xlu1 %542, %v574_v7   ;;  %v248_v7 = vld [vmem:[%s853_s3 + $0x58] sm:$0xff] }
  0xbd   :  { %597 = vpow2.f32 %v482_v10 }
  0xbe   :  { %v582_v14 = vpop.eup %581  ;;  %599 = vrcp.f32 %v196_v11 }
  0xbf   :  { %v584_v15 = vpop.eup %583  ;;  %300 = vperm.xlu0 %541, %v582_v14   ;;  %v250_v14 = vld [vmem:[%s853_s3 + $0x68] sm:$0xff] }
  0xc0   :  { %v586_v17 = vpop.eup %585  ;;  %v204_v18 = vadd.f32 1.0, %v584_v15  ;;  %275 = vperm.xlu1 %542, %v580_v13   ;;  %v249_v15 = vld [vmem:[%s853_s3 + $0x60] sm:$0xff] }
  0xc1   :  { %v588_v19 = vpop.eup %587  ;;  %v199_v21 = vadd.f32 1.0, %v586_v17 }
  0xc2   :  { %v590_v20 = vpop.eup %589  ;;  %601 = vrcp.f32 %v204_v18 }
  0xc3   :  { %603 = vrcp.f32 %v197_v16  ;;  %310 = vperm.xlu0 %541, %v590_v20   ;;  %v592_v22 = vpop.eup %591  ;;  %v252_v20 = vld [vmem:[%s853_s3 + $0x78] sm:$0xff] }
  0xc4   :  { %280 = vperm.xlu1 %542, %v588_v19   ;;  %v594_v23 = vpop.eup %593  ;;  %605 = vrcp.f32 %v199_v21  ;;  %v201_v25 = vadd.f32 1.0, %v592_v22  ;;  %v251_v22 = vld [vmem:[%s853_s3 + $0x70] sm:$0xff] }
  0xc6   :  { %v596_v24 = vpop.eup %595  ;;  %607 = vrcp.f32 %v201_v25 }
  0xc7   :  { %320 = vperm.xlu0 %541, %v596_v24   ;;  %v598_v26 = vpop.eup %597 }
  0xc8   :  { %285 = vperm.xlu1 %542, %v594_v23   ;;  %v600_v27 = vpop.eup %599  ;;  %v203_v28 = vadd.f32 1.0, %v598_v26 }
  0xca   :  { %609 = vrcp.f32 %v203_v28  ;;  %v545_v28 = vld [vmem:[%s852_s4 + $0x8] sm:$0xff]  }
  0xcc   :  { %v602_v29 = vpop.eup %601  ;;  %290 = vperm.xlu1 %542, %v600_v27  }
  0xcd   :  { %v604_v30 = vpop.eup %603  ;;  %330 = vperm.xlu0 %541, %v602_v29   ;;  %v546_v29 = vld [vmem:[%s852_s4 + $0x18] sm:$0xff]  }
  0xce   :  { %v606_v31 = vpop.eup %605 }
  0xd0   :  { %295 = vperm.xlu1 %542, %v604_v30   ;;  %v608_v32 = vpop.eup %607 }
  0xd4   :  { %305 = vperm.xlu1 %542, %v606_v31   ;;  %v610_v33 = vpop.eup %609 }
  0xd8   :  { %315 = vperm.xlu1 %542, %v608_v32  }
  0xdc   :  { %325 = vperm.xlu1 %542, %v610_v33  }
 0x12f   :  { %v256_v37 = vpop.permute.xlu0 %255 }
 0x130   :  { %v333_v40 = vmul.f32 %v256_v37, %v237_v36 }
 0x133   :  { %v261_v39 = vpop.permute.xlu1 %260 }
 0x134   :  { %v334_v41 = vmul.f32 %v261_v39, %v238_v38 }
 0x136   :  { %v357_v42 = vpack.c.bf16 %v334_v41, %v333_v40 }
 0x137   :  { %v266_v43 = vpop.permute.xlu1 %265 }
 0x138   :  { %500 = vmatprep.subr.bf16.mxu0 %v357_v42  ;;  %524 = vmatprep.subr.bf16.mxu1 %v357_v42  ;;  %v335_v47 = vmul.f32 %v266_v43, %v239_v44 }
 0x139   :  { %501 = vmatpush3.bf16.msra.mxu0 %v357_v42  ;;  %532 = vmatpush3.bf16.msra.mxu1 %v357_v42 }
 0x13b   :  { %v271_v46 = vpop.permute.xlu1 %270 }
 0x13c   :  { %v336_v48 = vmul.f32 %v271_v46, %v240_v45 }
 0x13e   :  { %v358_v49 = vpack.c.bf16 %v336_v48, %v335_v47  ;;  %v301_v57 = vpop.permute.xlu0 %300 }
 0x13f   :  { %v276_v50 = vpop.permute.xlu1 %275  ;;  %v342_v5 = vmul.f32 %v301_v57, %v246_v0 }
 0x140   :  { %502 = vmatprep.subr.bf16.mxu0 %v358_v49  ;;  %525 = vmatprep.subr.bf16.mxu1 %v358_v49  ;;  %v337_v54 = vmul.f32 %v276_v50, %v241_v51 }
 0x141   :  { %503 = vmatpush3.bf16.msra.mxu0 %v358_v49  ;;  %533 = vmatpush3.bf16.msra.mxu1 %v358_v49 }
 0x142   :  { %v311_v1 = vpop.permute.xlu0 %310 }
 0x143   :  { %v281_v53 = vpop.permute.xlu1 %280  ;;  %v344_v12 = vmul.f32 %v311_v1, %v248_v7 }
 0x144   :  { %v338_v55 = vmul.f32 %v281_v53, %v242_v52 }
 0x146   :  { %v359_v56 = vpack.c.bf16 %v338_v55, %v337_v54  ;;  %v321_v10 = vpop.permute.xlu0 %320 }
 0x147   :  { %v286_v58 = vpop.permute.xlu1 %285  ;;  %v346_v18 = vmul.f32 %v321_v10, %v250_v14 }
 0x148   :  { %504 = vmatprep.subr.bf16.mxu0 %v359_v56  ;;  %526 = vmatprep.subr.bf16.mxu1 %v359_v56  ;;  %v339_v62 = vmul.f32 %v286_v58, %v243_v59 }
 0x149   :  { %505 = vmatpush3.bf16.msra.mxu0 %v359_v56  ;;  %534 = vmatpush3.bf16.msra.mxu1 %v359_v56 }
 0x14b   :  { %v291_v61 = vpop.permute.xlu1 %290 }
 0x14c   :  { %v340_v63 = vmul.f32 %v291_v61, %v244_v60  ;;  %v331_v21 = vpop.permute.xlu0 %330 }
 0x14d   :  { %v348_v25 = vmul.f32 %v331_v21, %v252_v20 }
 0x14e   :  { %v360_v3 = vpack.c.bf16 %v340_v63, %v339_v62 }
 0x14f   :  { %v296_v4 = vpop.permute.xlu1 %295 }
 0x150   :  { %v341_v6 = vmul.f32 %v296_v4, %v245_v2  ;;  %506 = vmatprep.subr.bf16.mxu0 %v360_v3  ;;  %527 = vmatprep.subr.bf16.mxu1 %v360_v3 }
 0x151   :  { %507 = vmatpush3.bf16.msra.mxu0 %v360_v3  ;;  %535 = vmatpush3.bf16.msra.mxu1 %v360_v3 }
 0x152   :  { %v361_v9 = vpack.c.bf16 %v342_v5, %v341_v6 }
 0x153   :  { %v306_v11 = vpop.permute.xlu1 %305 }
 0x154   :  { %v343_v13 = vmul.f32 %v306_v11, %v247_v8  ;;  %508 = vmatprep.subr.bf16.mxu0 %v361_v9  ;;  %528 = vmatprep.subr.bf16.mxu1 %v361_v9 }
 0x155   :  { %509 = vmatpush3.bf16.msra.mxu0 %v361_v9  ;;  %536 = vmatpush3.bf16.msra.mxu1 %v361_v9 }
 0x156   :  { %v362_v16 = vpack.c.bf16 %v344_v12, %v343_v13 }
 0x157   :  { %v316_v17 = vpop.permute.xlu1 %315 }
 0x158   :  { %v345_v19 = vmul.f32 %v316_v17, %v249_v15  ;;  %510 = vmatprep.subr.bf16.mxu0 %v362_v16  ;;  %529 = vmatprep.subr.bf16.mxu1 %v362_v16 }
 0x159   :  { %511 = vmatpush3.bf16.msra.mxu0 %v362_v16  ;;  %537 = vmatpush3.bf16.msra.mxu1 %v362_v16 }
 0x15a   :  { %v363_v23 = vpack.c.bf16 %v346_v18, %v345_v19 }
 0x15b   :  { %v326_v24 = vpop.permute.xlu1 %325 }
 0x15c   :  { %v347_v26 = vmul.f32 %v326_v24, %v251_v22  ;;  %512 = vmatprep.subr.bf16.mxu0 %v363_v23  ;;  %530 = vmatprep.subr.bf16.mxu1 %v363_v23 }
 0x15d   :  { %513 = vmatpush3.bf16.msra.mxu0 %v363_v23  ;;  %538 = vmatpush3.bf16.msra.mxu1 %v363_v23 }
 0x15e   :  { %v364_v27 = vpack.c.bf16 %v348_v25, %v347_v26 }
 0x160   :  { %514 = vmatprep.subr.bf16.mxu0 %v364_v27  ;;  %531 = vmatprep.subr.bf16.mxu1 %v364_v27 }
 0x161   :  { %515 = vmatpush3.bf16.msra.mxu0 %v364_v27  ;;  %539 = vmatpush3.bf16.msra.mxu1 %v364_v27 }
 0x164   :  { %517 = vmatmul.mubr.bf16.vlgmr.msra.gmra.mrb[0].mxu0 %v545_v28  ;;  %521 = vmatmul.mubr.bf16.vlgmr.msra.gmra.mrb[0].mxu1 %v546_v29 }
 0x237   :  { %v518_v30 = vpop.f32.mrb[0].mxu0  ;;  %v522_v31 = vpop.f32.mrb[0].mxu1 }
 0x238   :  { %457 = vst.msk [vmem:[%s854_s5 + $0x10] sm:$0xff] %vm454_vm1, %v518_v30  ;;  %461 = vst.msk [vmem:[%s854_s5 + $0x30] sm:$0xff] %vm454_vm1, %v522_v31  ;;  %v423_v32 = vpop.f32.mrb[1].mxu0  ;;  %v439_v33 = vpop.f32.mrb[1].mxu1 }
 0x239   :  { %455 = vst.msk [vmem:[%s854_s5] sm:$0xff] %vm454_vm1, %v423_v32  ;;  %459 = vst.msk [vmem:[%s854_s5 + $0x20] sm:$0xff] %vm454_vm1, %v439_v33  ;;  %v519_v34 = vpop.f32.mrb[2].mxu0  ;;  %v523_v35 = vpop.f32.mrb[2].mxu1 }
 0x23a   :  { %458 = vst.msk [vmem:[%s854_s5 + $0x18] sm:$0xff] %vm454_vm1, %v519_v34  ;;  %462 = vst.msk [vmem:[%s854_s5 + $0x38] sm:$0xff] %vm454_vm1, %v523_v35  ;;  %v426_v36 = vpop.f32.mrb[3].mxu0  ;;  %v442_v37 = vpop.f32.mrb[3].mxu1 }
 0x23b   :  { %456 = vst.msk [vmem:[%s854_s5 + $0x8] sm:$0xff] %vm454_vm1, %v426_v36  ;;  %460 = vst.msk [vmem:[%s854_s5 + $0x28] sm:$0xff] %vm454_vm1, %v442_v37 }

</bundles_post_ra>
